<compile_context>
chip_gen: v7x
topology: tpu7x:2x2x1
jax: 0.10.0
libtpu: 0.0.40
codegen_flags: <defaults>
</compile_context>

<pallas_src>
import jax
import jax.numpy as jnp
from jax.experimental import pallas as pl
from jax.experimental.pallas import tpu as pltpu

D_IN = 32 * 32 * 3   # 3072
D_H = 50
D_OUT = 10
D_OUT_PAD = 128      # lane-dense output width (first D_OUT columns are real)
NEG_BIG = -1e30      # bias value for padded logit columns (exp underflows to 0)


def _mlp_kernel(x_ref, w1_ref, b1_ref, w2_ref, b2_ref, w3_ref, b3_ref, o_ref):
    """One batch tile of the full forward pass.

    x_ref : (TB, 3072) f32 (streamed per grid step; cast to bf16 here)
    w1    : (3072, 50)  bf16, b1: (1, 50)  f32   (VMEM-resident)
    w2    : (50, 50)    bf16, b2: (1, 50)  f32
    w3    : (50, 128)   bf16 (cols 10..127 zero), b3: (1, 128) f32 (cols 10.. = -1e30)
    o_ref : (TB, 128) f32; cols 0..9 hold log-probabilities, rest ~-1e30.
    """
    # Cast the streamed f32 tile to bf16 on the VPU (MXU operand).
    x = x_ref[...].astype(jnp.bfloat16)

    # fc1 + sigmoid: bf16 MXU matmul with f32 accumulation, f32 elementwise.
    h1 = jnp.dot(x, w1_ref[...], preferred_element_type=jnp.float32) + b1_ref[...]
    h1 = jax.nn.sigmoid(h1)

    # fc2 + sigmoid (cast activation back to bf16 only for the MXU operand).
    h2 = jnp.dot(h1.astype(jnp.bfloat16), w2_ref[...],
                 preferred_element_type=jnp.float32) + b2_ref[...]
    h2 = jax.nn.sigmoid(h2)

    # fc3: 128-wide logits; padded columns are 0 (weight) + (-1e30) (bias).
    logits = jnp.dot(h2.astype(jnp.bfloat16), w3_ref[...],
                     preferred_element_type=jnp.float32) + b3_ref[...]

    # log_softmax over the last axis, numerically stable, in f32.  Padded
    # columns contribute exp(-huge) == 0 to the sum, so the first 10 columns
    # equal the 10-way log_softmax exactly.
    m = jnp.max(logits, axis=-1, keepdims=True)
    shifted = logits - m
    lse = jnp.log(jnp.sum(jnp.exp(shifted), axis=-1, keepdims=True))
    o_ref[...] = (shifted - lse).astype(o_ref.dtype)


def _round_up(n, m):
    return ((n + m - 1) // m) * m


def _choose_tb(B, tb_max):
    """Batch-tile rows. Multiple of 8 (or == B) so block shapes are legal."""
    if B > tb_max:
        return tb_max
    if B >= 256:
        # >= 2 grid steps so dimension_semantics=("parallel",) can feed both
        # TensorCores on v7x (roughly free on v5e/v6e).
        return _round_up(pl.cdiv(B, 2), 8)
    # Tiny batch: a single exact-size tile (block dim == array dim is legal).
    return B


def net_forward(x_nchw, params, *, tb_max=1024):
    """x_nchw: (B, 3, 32, 32) float32.  Returns (B, 10) f32 log-probs.

    tb_max: batch-tile rows.  1024 (f32 x-tile 12 MiB, double-buffered) fits
    all generations including v7x's 64 MiB VMEM; on v5e/v6e (128 MiB VMEM) it
    may be raised to 2048 to amortize per-step overhead further.
    """
    w1, b1, w2, b2, w3, b3 = params
    B = x_nchw.shape[0]
    # Row-major flatten == torch .view(-1, 3072) on contiguous NCHW.
    # No dtype cast, no padding: stream f32 straight from HBM.
    x2d = x_nchw.reshape(B, D_IN)

    TB = _choose_tb(B, tb_max)
    grid = pl.cdiv(B, TB)

    # bf16 MXU weight operands (tiny one-time casts); biases stay f32.
    w1_bf = w1.astype(jnp.bfloat16)
    w2_bf = w2.astype(jnp.bfloat16)
    # Lane-dense fc3: zero-pad weights to 128 output lanes, bias pads to -1e30
    # so padded logits vanish under softmax.
    w3_bf = jnp.pad(w3.astype(jnp.bfloat16), ((0, 0), (0, D_OUT_PAD - D_OUT)))
    b3_pad = jnp.pad(b3, ((0, 0), (0, D_OUT_PAD - D_OUT)), constant_values=NEG_BIG)

    # VMEM budget: double-buffered x tile + double-buffered out tile + weights,
    # with headroom.  Floor 32 MiB (v5e scoped default is only 16 MiB), cap
    # 48 MiB (never request all of v7x's 64 MiB physical VMEM).
    x_tile_bytes = TB * D_IN * 4
    out_tile_bytes = TB * D_OUT_PAD * 4
    weights_bytes = 2 << 20
    need = 2 * (x_tile_bytes + out_tile_bytes) + weights_bytes
    vmem_limit = int(max(32 << 20, min(need + (8 << 20), 48 << 20)))

    const = lambda i: (0, 0)  # weights/biases: same block every step -> resident

    out = pl.pallas_call(
        _mlp_kernel,
        out_shape=jax.ShapeDtypeStruct((B, D_OUT_PAD), jnp.float32),
        grid_spec=pltpu.PrefetchScalarGridSpec(
            num_scalar_prefetch=0,
            grid=(grid,),
            in_specs=[
                pl.BlockSpec((TB, D_IN), lambda i: (i, 0)),     # x, streamed f32
                pl.BlockSpec((D_IN, D_H), const),               # w1
                pl.BlockSpec((1, D_H), const),                  # b1
                pl.BlockSpec((D_H, D_H), const),                # w2
                pl.BlockSpec((1, D_H), const),                  # b2
                pl.BlockSpec((D_H, D_OUT_PAD), const),          # w3 (padded)
                pl.BlockSpec((1, D_OUT_PAD), const),            # b3 (padded)
            ],
            out_specs=pl.BlockSpec((TB, D_OUT_PAD), lambda i: (i, 0)),
        ),
        compiler_params=pltpu.CompilerParams(
            dimension_semantics=("parallel",),   # shard batch tiles across TCs
            vmem_limit_bytes=vmem_limit,
        ),
    )(x2d, w1_bf, b1, w2_bf, b2, w3_bf, b3_pad)

    # Drop padded lanes (and any masked OOB rows never exist: out rows == B).
    return out[:, :D_OUT]


def init_params(key):
    """Deterministic parameter init (same shapes as the torch module)."""
    k1, k2, k3, k4, k5, k6 = jax.random.split(key, 6)

    def uinit(k, shape, fan_in):
        bound = 1.0 / jnp.sqrt(fan_in)
        return jax.random.uniform(k, shape, jnp.float32, -bound, bound)

    # Stored as W[in, out]; biases as (1, out) rows for clean TPU layout.
    w1 = uinit(k1, (D_IN, D_H), D_IN)
    b1 = uinit(k2, (1, D_H), D_IN)
    w2 = uinit(k3, (D_H, D_H), D_H)
    b2 = uinit(k4, (1, D_H), D_H)
    w3 = uinit(k5, (D_H, D_OUT), D_H)
    b3 = uinit(k6, (1, D_OUT), D_H)
    return (w1, b1, w2, b2, w3, b3)


def _reference_bf16(x_nchw, params):
    """Pure-JAX reference with the same bf16 operand quantization (f32 accum)."""
    w1, b1, w2, b2, w3, b3 = params
    x = x_nchw.reshape(x_nchw.shape[0], -1).astype(jnp.bfloat16)
    h1 = jax.nn.sigmoid(
        jnp.dot(x, w1.astype(jnp.bfloat16), preferred_element_type=jnp.float32) + b1)
    h2 = jax.nn.sigmoid(
        jnp.dot(h1.astype(jnp.bfloat16), w2.astype(jnp.bfloat16),
                preferred_element_type=jnp.float32) + b2)
    logits = jnp.dot(h2.astype(jnp.bfloat16), w3.astype(jnp.bfloat16),
                     preferred_element_type=jnp.float32) + b3
    return jax.nn.log_softmax(logits, axis=1)


def _reference_f32(x_nchw, params):
    """Full-precision reference (matches the torch module semantics)."""
    w1, b1, w2, b2, w3, b3 = params
    x = x_nchw.reshape(x_nchw.shape[0], -1)
    h1 = jax.nn.sigmoid(x @ w1 + b1)
    h2 = jax.nn.sigmoid(h1 @ w2 + b2)
    return jax.nn.log_softmax(h2 @ w3 + b3, axis=1)


if __name__ == "__main__":
    key = jax.random.PRNGKey(0)
    k_params, k_x = jax.random.split(key)

    params = init_params(k_params)
    x = jax.random.normal(k_x, (2, 3, 32, 32), dtype=jnp.float32)  # B=2, NCHW

    out = net_forward(x, params)
    out = jax.block_until_ready(out)
    assert out.shape == (2, 10)

    # Tight check vs a reference using the same bf16 operand quantization.
    ref_bf = _reference_bf16(x, params)
    assert jnp.allclose(out, ref_bf, atol=1e-4, rtol=1e-4), "mismatch vs bf16 reference"

    # Loose sanity check vs the full-f32 reference (bf16 rounding tolerance).
    ref_f32 = _reference_f32(x, params)
    assert jnp.allclose(out, ref_f32, atol=5e-2, rtol=5e-2), "mismatch vs f32 reference"

    print("KERNEL_OK")
</pallas_src>

<mosaic_0001>
module attributes {stable_mosaic.version = 11 : i64} {
  func.func @_mlp_kernel(%arg0: i32, %arg1: memref<2x3072xf32, #tpu.memory_space<vmem>>, %arg2: memref<3072x50xbf16, #tpu.memory_space<vmem>>, %arg3: memref<1x50xf32, #tpu.memory_space<vmem>>, %arg4: memref<50x50xbf16, #tpu.memory_space<vmem>>, %arg5: memref<1x50xf32, #tpu.memory_space<vmem>>, %arg6: memref<50x128xbf16, #tpu.memory_space<vmem>>, %arg7: memref<1x128xf32, #tpu.memory_space<vmem>>, %arg8: memref<2x128xf32, #tpu.memory_space<vmem>>) attributes {dimension_semantics = [#tpu.dimension_semantics<parallel>], iteration_bounds = array<i64: 1>, scalar_prefetch = 0 : i64, scratch_operands = 0 : i64, tpu.core_type = #tpu.core_type<tc>, window_params = [{transform_indices = @transform_0, window_bounds = array<i64: 2, 3072>}, {pipeline_mode = #tpu.pipeline_mode<synchronous>, transform_indices = @transform_1, window_bounds = array<i64: 3072, 50>}, {pipeline_mode = #tpu.pipeline_mode<synchronous>, transform_indices = @transform_2, window_bounds = array<i64: 1, 50>}, {pipeline_mode = #tpu.pipeline_mode<synchronous>, transform_indices = @transform_3, window_bounds = array<i64: 50, 50>}, {pipeline_mode = #tpu.pipeline_mode<synchronous>, transform_indices = @transform_4, window_bounds = array<i64: 1, 50>}, {pipeline_mode = #tpu.pipeline_mode<synchronous>, transform_indices = @transform_5, window_bounds = array<i64: 50, 128>}, {pipeline_mode = #tpu.pipeline_mode<synchronous>, transform_indices = @transform_6, window_bounds = array<i64: 1, 128>}, {transform_indices = @transform_7, window_bounds = array<i64: 2, 128>}]} {
    %c0 = arith.constant 0 : index
    %c0_0 = arith.constant 0 : index
    %0 = vector.load %arg1[%c0, %c0_0] : memref<2x3072xf32, #tpu.memory_space<vmem>>, vector<2x3072xf32>
    %1 = arith.truncf %0 : vector<2x3072xf32> to vector<2x3072xbf16>
    %c0_1 = arith.constant 0 : index
    %c0_2 = arith.constant 0 : index
    %2 = vector.load %arg2[%c0_1, %c0_2] : memref<3072x50xbf16, #tpu.memory_space<vmem>>, vector<3072x50xbf16>
    %cst = arith.constant dense<0.000000e+00> : vector<2x50xf32>
    %3 = tpu.matmul %1, %2, %cst {dimension_numbers = #tpu.dot_dimension_numbers<[1], [0], [0], [1], [0, 0, 1, 1], [], []>} : vector<2x3072xbf16>, vector<3072x50xbf16>, vector<2x50xf32> -> vector<2x50xf32>
    %c0_3 = arith.constant 0 : index
    %c0_4 = arith.constant 0 : index
    %4 = vector.load %arg3[%c0_3, %c0_4] : memref<1x50xf32, #tpu.memory_space<vmem>>, vector<1x50xf32>
    %5 = vector.broadcast %4 : vector<1x50xf32> to vector<2x50xf32>
    %6 = arith.addf %3, %5 : vector<2x50xf32>
    %7 = arith.negf %6 : vector<2x50xf32>
    %8 = math.exp %7 : vector<2x50xf32>
    %cst_5 = arith.constant 1.000000e+00 : f32
    %9 = vector.broadcast %cst_5 : f32 to vector<2x50xf32>
    %10 = arith.addf %9, %8 : vector<2x50xf32>
    %11 = arith.divf %9, %10 : vector<2x50xf32>
    %12 = arith.truncf %11 : vector<2x50xf32> to vector<2x50xbf16>
    %c0_6 = arith.constant 0 : index
    %c0_7 = arith.constant 0 : index
    %13 = vector.load %arg4[%c0_6, %c0_7] : memref<50x50xbf16, #tpu.memory_space<vmem>>, vector<50x50xbf16>
    %cst_8 = arith.constant dense<0.000000e+00> : vector<2x50xf32>
    %14 = tpu.matmul %12, %13, %cst_8 {dimension_numbers = #tpu.dot_dimension_numbers<[1], [0], [0], [1], [0, 0, 1, 1], [], []>} : vector<2x50xbf16>, vector<50x50xbf16>, vector<2x50xf32> -> vector<2x50xf32>
    %c0_9 = arith.constant 0 : index
    %c0_10 = arith.constant 0 : index
    %15 = vector.load %arg5[%c0_9, %c0_10] : memref<1x50xf32, #tpu.memory_space<vmem>>, vector<1x50xf32>
    %16 = vector.broadcast %15 : vector<1x50xf32> to vector<2x50xf32>
    %17 = arith.addf %14, %16 : vector<2x50xf32>
    %18 = arith.negf %17 : vector<2x50xf32>
    %19 = math.exp %18 : vector<2x50xf32>
    %cst_11 = arith.constant 1.000000e+00 : f32
    %20 = vector.broadcast %cst_11 : f32 to vector<2x50xf32>
    %21 = arith.addf %20, %19 : vector<2x50xf32>
    %22 = arith.divf %20, %21 : vector<2x50xf32>
    %23 = arith.truncf %22 : vector<2x50xf32> to vector<2x50xbf16>
    %c0_12 = arith.constant 0 : index
    %c0_13 = arith.constant 0 : index
    %24 = vector.load %arg6[%c0_12, %c0_13] : memref<50x128xbf16, #tpu.memory_space<vmem>>, vector<50x128xbf16>
    %cst_14 = arith.constant dense<0.000000e+00> : vector<2x128xf32>
    %25 = tpu.matmul %23, %24, %cst_14 {dimension_numbers = #tpu.dot_dimension_numbers<[1], [0], [0], [1], [0, 0, 1, 1], [], []>} : vector<2x50xbf16>, vector<50x128xbf16>, vector<2x128xf32> -> vector<2x128xf32>
    %c0_15 = arith.constant 0 : index
    %c0_16 = arith.constant 0 : index
    %26 = vector.load %arg7[%c0_15, %c0_16] : memref<1x128xf32, #tpu.memory_space<vmem>>, vector<1x128xf32>
    %27 = vector.broadcast %26 : vector<1x128xf32> to vector<2x128xf32>
    %28 = arith.addf %25, %27 : vector<2x128xf32>
    %cst_17 = arith.constant dense<0xFF800000> : vector<2xf32>
    %29 = vector.multi_reduction <maximumf>, %28, %cst_17 [1] : vector<2x128xf32> to vector<2xf32>
    %30 = vector.shape_cast %29 : vector<2xf32> to vector<2x1xf32>
    %31 = vector.broadcast %30 : vector<2x1xf32> to vector<2x128xf32>
    %32 = arith.subf %28, %31 : vector<2x128xf32>
    %33 = math.exp %32 : vector<2x128xf32>
    %cst_18 = arith.constant dense<0.000000e+00> : vector<2xf32>
    %34 = vector.multi_reduction <add>, %33, %cst_18 [1] : vector<2x128xf32> to vector<2xf32>
    %35 = vector.shape_cast %34 : vector<2xf32> to vector<2x1xf32>
    %36 = math.log %35 : vector<2x1xf32>
    %37 = vector.broadcast %36 : vector<2x1xf32> to vector<2x128xf32>
    %38 = arith.subf %32, %37 : vector<2x128xf32>
    %c0_19 = arith.constant 0 : index
    %c0_20 = arith.constant 0 : index
    %39 = vector.load %arg8[%c0_19, %c0_20] : memref<2x128xf32, #tpu.memory_space<vmem>>, vector<2x128xf32>
    tpu.vector_store %arg8[%c0_19, %c0_20], %38 {strides = array<i32>} : memref<2x128xf32, #tpu.memory_space<vmem>>, vector<2x128xf32>,
    return
  }
  func.func @transform_0(%arg0: i32) -> (i32, i32) {
    %c0_i32 = arith.constant 0 : i32
    %c0_i32_0 = arith.constant 0 : i32
    return %arg0, %c0_i32 : i32, i32
  }
  func.func @transform_1(%arg0: i32) -> (i32, i32) {
    %c0_i32 = arith.constant 0 : i32
    %c0_i32_0 = arith.constant 0 : i32
    %c0_i32_1 = arith.constant 0 : i32
    return %c0_i32, %c0_i32_0 : i32, i32
  }
  func.func @transform_2(%arg0: i32) -> (i32, i32) {
    %c0_i32 = arith.constant 0 : i32
    %c0_i32_0 = arith.constant 0 : i32
    %c0_i32_1 = arith.constant 0 : i32
    return %c0_i32, %c0_i32_0 : i32, i32
  }
  func.func @transform_3(%arg0: i32) -> (i32, i32) {
    %c0_i32 = arith.constant 0 : i32
    %c0_i32_0 = arith.constant 0 : i32
    %c0_i32_1 = arith.constant 0 : i32
    return %c0_i32, %c0_i32_0 : i32, i32
  }
  func.func @transform_4(%arg0: i32) -> (i32, i32) {
    %c0_i32 = arith.constant 0 : i32
    %c0_i32_0 = arith.constant 0 : i32
    %c0_i32_1 = arith.constant 0 : i32
    return %c0_i32, %c0_i32_0 : i32, i32
  }
  func.func @transform_5(%arg0: i32) -> (i32, i32) {
    %c0_i32 = arith.constant 0 : i32
    %c0_i32_0 = arith.constant 0 : i32
    %c0_i32_1 = arith.constant 0 : i32
    return %c0_i32, %c0_i32_0 : i32, i32
  }
  func.func @transform_6(%arg0: i32) -> (i32, i32) {
    %c0_i32 = arith.constant 0 : i32
    %c0_i32_0 = arith.constant 0 : i32
    %c0_i32_1 = arith.constant 0 : i32
    return %c0_i32, %c0_i32_0 : i32, i32
  }
  func.func @transform_7(%arg0: i32) -> (i32, i32) {
    %c0_i32 = arith.constant 0 : i32
    %c0_i32_0 = arith.constant 0 : i32
    return %arg0, %c0_i32 : i32, i32
  }
}

</mosaic_0001>

<bundles_post_ra>
// kernel: tpu_custom_call.1
= control target key start
LH: loop header
LB: loop body
LE: loop exit
PB: predicated region body
PF: predicated region fallthrough
CT: control target
= control target key end

     0   :  { %v44_v28 = vlaneseq  ;;  %v3170_v36 = vmov 1983009808   ;;  %s3881_s0 = inlined_call_operand.vmem [shape: f32[2,3072], index: 0, kind: input, shape index: {}]   ;;  %s3882_s1 = inlined_call_operand.vmem [shape: bf16[3072,50], index: 1, kind: input, shape index: {}]   ;;  %s3883_s2 = inlined_call_operand.vmem [shape: f32[1,50], index: 2, kind: input, shape index: {}]   ;;  %s3884_s3 = inlined_call_operand.vmem [shape: bf16[50,50], index: 3, kind: input, shape index: {}]   ;;  %s3885_s4 = inlined_call_operand.vmem [shape: f32[1,50], index: 4, kind: input, shape index: {}]   ;;  %s3886_s5 = inlined_call_operand.vmem [shape: bf16[50,128], index: 5, kind: input, shape index: {}]   ;;  %s3887_s6 = inlined_call_operand.vmem [shape: f32[1,128], index: 6, kind: input, shape index: {}]   ;;  %s3888_s7 = inlined_call_operand.hbm [shape: f32[2,128], index: 7, kind: output, shape index: {}]  }
   0x1   :  { %v2928_v0 = vld [vmem:[%s3882_s1 + $0x40] sm:$0xff]   ;;  %v2932_v4 = vld [vmem:[%s3882_s1 + $0x48] sm:$0xff]   ;;  %v2936_v8 = vld [vmem:[%s3882_s1 + $0x50] sm:$0xff]   ;;  %v42_v37 = vunpack.c.l.s4 %v3170_v36 }
   0x2   :  { %v2929_v1 = vld [vmem:[%s3882_s1 + $0xc0] sm:$0xff]   ;;  %2626 = vmatprep.subr.bf16.mxu0 %v2928_v0  ;;  %v2933_v5 = vld [vmem:[%s3882_s1 + $0xc8] sm:$0xff]   ;;  %v2937_v9 = vld [vmem:[%s3882_s1 + $0xd0] sm:$0xff]   ;;  %v45_v33 = vshrl.u32 %v44_v28, 7 }
   0x3   :  { %v2930_v2 = vld [vmem:[%s3882_s1] sm:$0xff]   ;;  %2648 = vmatprep.subr.bf16.mxu1 %v2929_v1  ;;  %v2934_v6 = vld [vmem:[%s3882_s1 + $0x8] sm:$0xff]   ;;  %v2938_v10 = vld [vmem:[%s3882_s1 + $0x10] sm:$0xff]   ;;  %v43_v39 = vunpack.c.0.s8 %v42_v37 }
   0x4   :  { %v2931_v3 = vld [vmem:[%s3882_s1 + $0x80] sm:$0xff]   ;;  %2627 = vmatpush3.bf16.msra.mxu0 %v2930_v2  ;;  %v2935_v7 = vld [vmem:[%s3882_s1 + $0x88] sm:$0xff]   ;;  %v2939_v11 = vld [vmem:[%s3882_s1 + $0x90] sm:$0xff]  }
   0x5   :  { %2649 = vmatpush3.bf16.msra.mxu1 %v2931_v3  ;;  %2628 = vmatprep.subr.bf16.mxu0 %v2932_v4  ;;  %v2940_v12 = vld [vmem:[%s3882_s1 + $0x58] sm:$0xff]   ;;  %v2944_v16 = vld [vmem:[%s3882_s1 + $0x60] sm:$0xff]   ;;  %v2948_v20 = vld [vmem:[%s3882_s1 + $0x68] sm:$0xff]   ;;  %v3319_v41 = vsub.s32 %v43_v39, %v45_v33 }
   0x6   :  { %2650 = vmatprep.subr.bf16.mxu1 %v2933_v5  ;;  %v2941_v13 = vld [vmem:[%s3882_s1 + $0xd8] sm:$0xff]   ;;  %v2945_v17 = vld [vmem:[%s3882_s1 + $0xe0] sm:$0xff]   ;;  %v2949_v21 = vld [vmem:[%s3882_s1 + $0xe8] sm:$0xff]  }
   0x7   :  { %v2942_v14 = vld [vmem:[%s3882_s1 + $0x18] sm:$0xff]   ;;  %v2946_v18 = vld [vmem:[%s3882_s1 + $0x20] sm:$0xff]   ;;  %v2950_v22 = vld [vmem:[%s3882_s1 + $0x28] sm:$0xff]  }
   0x8   :  { %2629 = vmatpush3.bf16.msra.mxu0 %v2934_v6  ;;  %v2943_v15 = vld [vmem:[%s3882_s1 + $0x98] sm:$0xff]   ;;  %v2947_v19 = vld [vmem:[%s3882_s1 + $0xa0] sm:$0xff]   ;;  %v2951_v23 = vld [vmem:[%s3882_s1 + $0xa8] sm:$0xff]  }
   0x9   :  { %2651 = vmatpush3.bf16.msra.mxu1 %v2935_v7  ;;  %2630 = vmatprep.subr.bf16.mxu0 %v2936_v8  ;;  %v2952_v24 = vld [vmem:[%s3882_s1 + $0x70] sm:$0xff]   ;;  %v2956_v29 = vld [vmem:[%s3882_s1 + $0x78] sm:$0xff]   ;;  %v28_v34 = vld [vmem:[%s3881_s0] sm:$0xff] }
   0xa   :  { %2652 = vmatprep.subr.bf16.mxu1 %v2937_v9  ;;  %v2953_v25 = vld [vmem:[%s3882_s1 + $0xf0] sm:$0xff]   ;;  %v2957_v30 = vld [vmem:[%s3882_s1 + $0xf8] sm:$0xff]   ;;  %v2961_v35 = vld [vmem:[%s3882_s1 + $0x140] sm:$0xff]   ;;  %v40_v40 = vcombine.high %v28_v34, %v28_v34  ;;  %v47_v42 = vrot.slane %v28_v34, %v3319_v41 }
   0xb   :  { %v2954_v26 = vld [vmem:[%s3882_s1 + $0x30] sm:$0xff]   ;;  %v2958_v31 = vld [vmem:[%s3882_s1 + $0x38] sm:$0xff]   ;;  %v2962_v38 = vld [vmem:[%s3882_s1 + $0x1c0] sm:$0xff]  }
   0xc   :  { %2631 = vmatpush3.bf16.msra.mxu0 %v2938_v10  ;;  %v2955_v27 = vld [vmem:[%s3882_s1 + $0xb0] sm:$0xff]   ;;  %v2959_v32 = vld [vmem:[%s3882_s1 + $0xb8] sm:$0xff]   ;;  %v54_v43 = vrot.slane %v40_v40, %v3319_v41  ;;  %v55_v44 = vcombine.high %v47_v42, %v47_v42  ;;  %v2963_v46 = vld [vmem:[%s3882_s1 + $0x100] sm:$0xff]   ;;  %v166_v47 = vpack.c.bf16 %v47_v42, %v47_v42 }
   0xd   :  { %2653 = vmatpush3.bf16.msra.mxu1 %v2939_v11  ;;  %2632 = vmatprep.subr.bf16.mxu0 %v2940_v12  ;;  %v2964_v49 = vld [vmem:[%s3882_s1 + $0x180] sm:$0xff]   ;;  %v2965_v52 = vld [vmem:[%s3882_s1 + $0x148] sm:$0xff]   ;;  %v2969_v56 = vld [vmem:[%s3882_s1 + $0x150] sm:$0xff]  }
   0xe   :  { %2654 = vmatprep.subr.bf16.mxu1 %v2941_v13  ;;  %v56_v45 = vcombine.high %v54_v43, %v54_v43  ;;  %v168_v48 = vpack.c.bf16 %v54_v43, %v54_v43  ;;  %v167_v50 = vpack.c.bf16 %v55_v44, %v55_v44  ;;  %v2966_v53 = vld [vmem:[%s3882_s1 + $0x1c8] sm:$0xff]   ;;  %v2970_v57 = vld [vmem:[%s3882_s1 + $0x1d0] sm:$0xff]   ;;  %v2973_v60 = vld [vmem:[%s3882_s1 + $0x158] sm:$0xff]  }
   0xf   :  { %v2967_v54 = vld [vmem:[%s3882_s1 + $0x108] sm:$0xff]   ;;  %v2971_v58 = vld [vmem:[%s3882_s1 + $0x110] sm:$0xff]   ;;  %v2974_v61 = vld [vmem:[%s3882_s1 + $0x1d8] sm:$0xff]  }
  0x10   :  { %2633 = vmatpush3.bf16.msra.mxu0 %v2942_v14  ;;  %v169_v51 = vpack.c.bf16 %v56_v45, %v56_v45  ;;  %1765 = vmatprep.mubr.bf16.mxu0 %v167_v50  ;;  %v2968_v55 = vld [vmem:[%s3882_s1 + $0x188] sm:$0xff]   ;;  %v2972_v59 = vld [vmem:[%s3882_s1 + $0x190] sm:$0xff]   ;;  %v2975_v62 = vld [vmem:[%s3882_s1 + $0x118] sm:$0xff]  }
  0x11   :  { %2655 = vmatpush3.bf16.msra.mxu1 %v2943_v15  ;;  %2634 = vmatprep.subr.bf16.mxu0 %v2944_v16  ;;  %v2976_v63 = vld [vmem:[%s3882_s1 + $0x198] sm:$0xff]   ;;  %v2977_v0 = vld [vmem:[%s3882_s1 + $0x160] sm:$0xff]   ;;  %v2981_v4 = vld [vmem:[%s3882_s1 + $0x168] sm:$0xff]  }
  0x12   :  { %2656 = vmatprep.subr.bf16.mxu1 %v2945_v17  ;;  %1805 = vmatprep.mubr.bf16.mxu1 %v169_v51  ;;  %v2978_v1 = vld [vmem:[%s3882_s1 + $0x1e0] sm:$0xff]   ;;  %v2982_v5 = vld [vmem:[%s3882_s1 + $0x1e8] sm:$0xff]   ;;  %v2985_v8 = vld [vmem:[%s3882_s1 + $0x170] sm:$0xff]  }
  0x13   :  { %v2979_v2 = vld [vmem:[%s3882_s1 + $0x120] sm:$0xff]   ;;  %v2983_v6 = vld [vmem:[%s3882_s1 + $0x128] sm:$0xff]   ;;  %v2986_v9 = vld [vmem:[%s3882_s1 + $0x1f0] sm:$0xff]  }
  0x14   :  { %2635 = vmatpush3.bf16.msra.mxu0 %v2946_v18  ;;  %v2980_v3 = vld [vmem:[%s3882_s1 + $0x1a0] sm:$0xff]   ;;  %v2984_v7 = vld [vmem:[%s3882_s1 + $0x1a8] sm:$0xff]   ;;  %v2987_v11 = vld [vmem:[%s3882_s1 + $0x130] sm:$0xff]  }
  0x15   :  { %2657 = vmatpush3.bf16.msra.mxu1 %v2947_v19  ;;  %2636 = vmatprep.subr.bf16.mxu0 %v2948_v20  ;;  %v29_v10 = vld [vmem:[%s3881_s0 + $0x8] sm:$0xff]  ;;  %v2988_v14 = vld [vmem:[%s3882_s1 + $0x1b0] sm:$0xff]   ;;  %v2989_v15 = vld [vmem:[%s3882_s1 + $0x178] sm:$0xff]  }
  0x16   :  { %2658 = vmatprep.subr.bf16.mxu1 %v2949_v21  ;;  %v64_v12 = vrot.slane %v29_v10, %v3319_v41  ;;  %v57_v13 = vcombine.high %v29_v10, %v29_v10  ;;  %v2990_v18 = vld [vmem:[%s3882_s1 + $0x1f8] sm:$0xff]   ;;  %v3001_v33 = vld [vmem:[%s3882_s1 + $0x288] sm:$0xff]   ;;  %v3002_v34 = vld [vmem:[%s3882_s1 + $0x250] sm:$0xff]  }
  0x17   :  { %v2991_v19 = vld [vmem:[%s3882_s1 + $0x138] sm:$0xff]   ;;  %v3004_v36 = vld [vmem:[%s3882_s1 + $0x210] sm:$0xff]   ;;  %v3010_v43 = vld [vmem:[%s3882_s1 + $0x260] sm:$0xff]  }
  0x18   :  { %2637 = vmatpush3.bf16.msra.mxu0 %v2950_v22  ;;  %v72_v16 = vcombine.high %v64_v12, %v64_v12  ;;  %v71_v17 = vrot.slane %v57_v13, %v3319_v41  ;;  %v2992_v22 = vld [vmem:[%s3882_s1 + $0x1b8] sm:$0xff]   ;;  %v3005_v37 = vld [vmem:[%s3882_s1 + $0x290] sm:$0xff]   ;;  %v3011_v44 = vld [vmem:[%s3882_s1 + $0x2e0] sm:$0xff]  }
  0x19   :  { %2659 = vmatpush3.bf16.msra.mxu1 %v2951_v23  ;;  %2638 = vmatprep.subr.bf16.mxu0 %v2952_v24  ;;  %v2994_v24 = vld [vmem:[%s3882_s1 + $0x240] sm:$0xff]   ;;  %v3007_v39 = vld [vmem:[%s3882_s1 + $0x2d8] sm:$0xff]   ;;  %v3017_v50 = vld [vmem:[%s3882_s1 + $0x2a8] sm:$0xff]  }
  0x1a   :  { %2660 = vmatprep.subr.bf16.mxu1 %v2953_v25  ;;  %v171_v20 = vpack.c.bf16 %v72_v16, %v72_v16  ;;  %v73_v21 = vcombine.high %v71_v17, %v71_v17  ;;  %v2995_v25 = vld [vmem:[%s3882_s1 + $0x2c0] sm:$0xff]   ;;  %v172_v28 = vpack.c.bf16 %v71_v17, %v71_v17  ;;  %v3008_v40 = vld [vmem:[%s3882_s1 + $0x218] sm:$0xff]   ;;  %v3018_v51 = vld [vmem:[%s3882_s1 + $0x270] sm:$0xff]  }
  0x1b   :  { %v3009_v42 = vld [vmem:[%s3882_s1 + $0x298] sm:$0xff]   ;;  %v3012_v45 = vld [vmem:[%s3882_s1 + $0x220] sm:$0xff]   ;;  %v3032_v10 = vld [vmem:[%s3882_s1 + $0x3c8] sm:$0xff]  }
  0x1c   :  { %2639 = vmatpush3.bf16.msra.mxu0 %v2954_v26  ;;  %v173_v23 = vpack.c.bf16 %v73_v21, %v73_v21  ;;  %v2996_v26 = vld [vmem:[%s3882_s1 + $0x200] sm:$0xff]   ;;  %v3035_v13 = vld [vmem:[%s3882_s1 + $0x350] sm:$0xff]   ;;  %v3039_v17 = vld [vmem:[%s3882_s1 + $0x358] sm:$0xff]  }
  0x1d   :  { %2661 = vmatpush3.bf16.msra.mxu1 %v2955_v27  ;;  %2640 = vmatprep.subr.bf16.mxu0 %v2956_v29  ;;  %v170_v27 = vpack.c.bf16 %v64_v12, %v64_v12  ;;  %v2997_v29 = vld [vmem:[%s3882_s1 + $0x280] sm:$0xff]   ;;  %v3034_v12 = vld [vmem:[%s3882_s1 + $0x388] sm:$0xff]   ;;  %v3038_v16 = vld [vmem:[%s3882_s1 + $0x390] sm:$0xff]  }
  0x1e   :  { %2662 = vmatprep.subr.bf16.mxu1 %v2957_v30  ;;  %v2998_v30 = vld [vmem:[%s3882_s1 + $0x248] sm:$0xff]   ;;  %v3043_v21 = vld [vmem:[%s3882_s1 + $0x360] sm:$0xff]  }
  0x20   :  { %2641 = vmatpush3.bf16.msra.mxu0 %v2958_v31  ;;  %v2999_v31 = vld [vmem:[%s3882_s1 + $0x2c8] sm:$0xff]  }
  0x21   :  { %2663 = vmatpush3.bf16.msra.mxu1 %v2959_v32  ;;  %2670 = vmatprep.subr.bf16.mxu0 %v2961_v35  ;;  %v3000_v32 = vld [vmem:[%s3882_s1 + $0x208] sm:$0xff]   ;;  %v3003_v35 = vld [vmem:[%s3882_s1 + $0x2d0] sm:$0xff]  }
  0x22   :  { %2692 = vmatprep.subr.bf16.mxu1 %v2962_v38  ;;  %v3006_v38 = vld [vmem:[%s3882_s1 + $0x258] sm:$0xff]  }
  0x23   :  { %1766 = vmatmul.mubr.bf16.vlgmr.msra.gmra.mrb[0].mxu0 %v166_v47  ;;  %v3014_v47 = vld [vmem:[%s3882_s1 + $0x268] sm:$0xff]  }
  0x24   :  { %1806 = vmatmul.mubr.bf16.vlgmr.msra.gmra.mrb[0].mxu1 %v168_v48  ;;  %2671 = vmatpush3.bf16.msra.mxu0 %v2963_v46  ;;  %v3013_v46 = vld [vmem:[%s3882_s1 + $0x2a0] sm:$0xff]   ;;  %v3015_v48 = vld [vmem:[%s3882_s1 + $0x2e8] sm:$0xff]  }
  0x25   :  { %2693 = vmatpush3.bf16.msra.mxu1 %v2964_v49  ;;  %2672 = vmatprep.subr.bf16.mxu0 %v2965_v52  ;;  %v3016_v49 = vld [vmem:[%s3882_s1 + $0x228] sm:$0xff]   ;;  %v3019_v52 = vld [vmem:[%s3882_s1 + $0x2f0] sm:$0xff]  }
  0x26   :  { %2694 = vmatprep.subr.bf16.mxu1 %v2966_v53  ;;  %1845 = vmatprep.mubr.bf16.mxu0 %v171_v20  ;;  %v30_v53 = vld [vmem:[%s3881_s0 + $0x10] sm:$0xff]  ;;  %v3042_v20 = vld [vmem:[%s3882_s1 + $0x398] sm:$0xff]  }
  0x27   :  { %1885 = vmatprep.mubr.bf16.mxu1 %v173_v23  ;;  %v3045_v23 = vld [vmem:[%s3882_s1 + $0x320] sm:$0xff]  }
  0x28   :  { %2673 = vmatpush3.bf16.msra.mxu0 %v2967_v54  ;;  %v3020_v54 = vld [vmem:[%s3882_s1 + $0x230] sm:$0xff]  }
  0x29   :  { %2695 = vmatpush3.bf16.msra.mxu1 %v2968_v55  ;;  %2674 = vmatprep.subr.bf16.mxu0 %v2969_v56  ;;  %v81_v55 = vrot.slane %v30_v53, %v3319_v41  ;;  %v74_v56 = vcombine.high %v30_v53, %v30_v53  ;;  %v3065_v53 = vld [vmem:[%s3882_s1 + $0x4c8] sm:$0xff]  }
  0x2a   :  { %2696 = vmatprep.subr.bf16.mxu1 %v2970_v57  ;;  %v3021_v57 = vld [vmem:[%s3882_s1 + $0x2b0] sm:$0xff]  }
  0x2c   :  { %2675 = vmatpush3.bf16.msra.mxu0 %v2971_v58  ;;  %v3022_v58 = vld [vmem:[%s3882_s1 + $0x278] sm:$0xff]  }
  0x2d   :  { %2697 = vmatpush3.bf16.msra.mxu1 %v2972_v59  ;;  %2676 = vmatprep.subr.bf16.mxu0 %v2973_v60  ;;  %v89_v59 = vcombine.high %v81_v55, %v81_v55  ;;  %v88_v60 = vrot.slane %v74_v56, %v3319_v41  ;;  %v3068_v56 = vld [vmem:[%s3882_s1 + $0x450] sm:$0xff]  }
  0x2e   :  { %2698 = vmatprep.subr.bf16.mxu1 %v2974_v61  ;;  %v3023_v61 = vld [vmem:[%s3882_s1 + $0x2f8] sm:$0xff]  }
  0x30   :  { %2677 = vmatpush3.bf16.msra.mxu0 %v2975_v62  ;;  %v3024_v62 = vld [vmem:[%s3882_s1 + $0x238] sm:$0xff]  }
  0x31   :  { %2699 = vmatpush3.bf16.msra.mxu1 %v2976_v63  ;;  %2678 = vmatprep.subr.bf16.mxu0 %v2977_v0  ;;  %v175_v63 = vpack.c.bf16 %v89_v59, %v89_v59  ;;  %v90_v0 = vcombine.high %v88_v60, %v88_v60  ;;  %v3071_v59 = vld [vmem:[%s3882_s1 + $0x490] sm:$0xff]  }
  0x32   :  { %2700 = vmatprep.subr.bf16.mxu1 %v2978_v1  ;;  %v3025_v1 = vld [vmem:[%s3882_s1 + $0x2b8] sm:$0xff]  }
  0x34   :  { %2679 = vmatpush3.bf16.msra.mxu0 %v2979_v2  ;;  %v177_v2 = vpack.c.bf16 %v90_v0, %v90_v0  ;;  %v3076_v0 = vld [vmem:[%s3882_s1 + $0x460] sm:$0xff]  }
  0x35   :  { %2701 = vmatpush3.bf16.msra.mxu1 %v2980_v3  ;;  %2680 = vmatprep.subr.bf16.mxu0 %v2981_v4  ;;  %v3027_v3 = vld [vmem:[%s3882_s1 + $0x340] sm:$0xff]  }
  0x36   :  { %2702 = vmatprep.subr.bf16.mxu1 %v2982_v5  ;;  %v3028_v4 = vld [vmem:[%s3882_s1 + $0x3c0] sm:$0xff]  }
  0x37   :  { %v3029_v5 = vld [vmem:[%s3882_s1 + $0x300] sm:$0xff]  }
  0x38   :  { %2681 = vmatpush3.bf16.msra.mxu0 %v2983_v6  ;;  %v174_v6 = vpack.c.bf16 %v81_v55, %v81_v55  ;;  %v3067_v55 = vld [vmem:[%s3882_s1 + $0x488] sm:$0xff]  }
  0x39   :  { %2703 = vmatpush3.bf16.msra.mxu1 %v2984_v7  ;;  %2682 = vmatprep.subr.bf16.mxu0 %v2985_v8  ;;  %v176_v7 = vpack.c.bf16 %v88_v60, %v88_v60  ;;  %v3030_v8 = vld [vmem:[%s3882_s1 + $0x380] sm:$0xff]   ;;  %v3072_v60 = vld [vmem:[%s3882_s1 + $0x458] sm:$0xff]  }
  0x3a   :  { %2704 = vmatprep.subr.bf16.mxu1 %v2986_v9  ;;  %v3031_v9 = vld [vmem:[%s3882_s1 + $0x348] sm:$0xff]  }
  0x3c   :  { %2683 = vmatpush3.bf16.msra.mxu0 %v2987_v11  ;;  %v3033_v11 = vld [vmem:[%s3882_s1 + $0x308] sm:$0xff]  }
  0x3d   :  { %2705 = vmatpush3.bf16.msra.mxu1 %v2988_v14  ;;  %2684 = vmatprep.subr.bf16.mxu0 %v2989_v15  ;;  %v3036_v14 = vld [vmem:[%s3882_s1 + $0x3d0] sm:$0xff]  }
  0x3e   :  { %2706 = vmatprep.subr.bf16.mxu1 %v2990_v18  ;;  %v3037_v15 = vld [vmem:[%s3882_s1 + $0x310] sm:$0xff]   ;;  %v3040_v18 = vld [vmem:[%s3882_s1 + $0x3d8] sm:$0xff]  }
  0x40   :  { %2685 = vmatpush3.bf16.msra.mxu0 %v2991_v19  ;;  %v3041_v19 = vld [vmem:[%s3882_s1 + $0x318] sm:$0xff]  }
  0x41   :  { %2707 = vmatpush3.bf16.msra.mxu1 %v2992_v22  ;;  %2714 = vmatprep.subr.bf16.mxu0 %v2994_v24  ;;  %v3044_v22 = vld [vmem:[%s3882_s1 + $0x3e0] sm:$0xff]  }
  0x42   :  { %2736 = vmatprep.subr.bf16.mxu1 %v2995_v25  ;;  %v3046_v24 = vld [vmem:[%s3882_s1 + $0x3a0] sm:$0xff]   ;;  %v3047_v25 = vld [vmem:[%s3882_s1 + $0x368] sm:$0xff]  }
  0x43   :  { %1846 = vmatmul.mubr.bf16.vlgmr.msra.gmra.mrb[4].mxu0 %v170_v27  ;;  %v3049_v27 = vld [vmem:[%s3882_s1 + $0x328] sm:$0xff]  }
  0x44   :  { %1886 = vmatmul.mubr.bf16.vlgmr.msra.gmra.mrb[4].mxu1 %v172_v28  ;;  %2715 = vmatpush3.bf16.msra.mxu0 %v2996_v26  ;;  %v3048_v26 = vld [vmem:[%s3882_s1 + $0x3e8] sm:$0xff]  }
  0x45   :  { %2737 = vmatpush3.bf16.msra.mxu1 %v2997_v29  ;;  %2716 = vmatprep.subr.bf16.mxu0 %v2998_v30  ;;  %v3050_v28 = vld [vmem:[%s3882_s1 + $0x3a8] sm:$0xff]   ;;  %v3051_v29 = vld [vmem:[%s3882_s1 + $0x370] sm:$0xff]  }
  0x46   :  { %2738 = vmatprep.subr.bf16.mxu1 %v2999_v31  ;;  %1925 = vmatprep.mubr.bf16.mxu0 %v175_v63  ;;  %v3052_v30 = vld [vmem:[%s3882_s1 + $0x3f0] sm:$0xff]   ;;  %v3075_v63 = vld [vmem:[%s3882_s1 + $0x498] sm:$0xff]  }
  0x47   :  { %1965 = vmatprep.mubr.bf16.mxu1 %v177_v2  ;;  %v3053_v31 = vld [vmem:[%s3882_s1 + $0x330] sm:$0xff]   ;;  %v3078_v2 = vld [vmem:[%s3882_s1 + $0x420] sm:$0xff]  }
  0x48   :  { %2717 = vmatpush3.bf16.msra.mxu0 %v3000_v32  ;;  %v31_v32 = vld [vmem:[%s3881_s0 + $0x18] sm:$0xff] }
  0x49   :  { %2739 = vmatpush3.bf16.msra.mxu1 %v3001_v33  ;;  %2718 = vmatprep.subr.bf16.mxu0 %v3002_v34  ;;  %v3054_v33 = vld [vmem:[%s3882_s1 + $0x3b0] sm:$0xff]   ;;  %v98_v34 = vrot.slane %v31_v32, %v3319_v41 }
  0x4a   :  { %2740 = vmatprep.subr.bf16.mxu1 %v3003_v35  ;;  %v91_v35 = vcombine.high %v31_v32, %v31_v32  ;;  %v3099_v32 = vld [vmem:[%s3882_s1 + $0x508] sm:$0xff]  }
  0x4c   :  { %2719 = vmatpush3.bf16.msra.mxu0 %v3004_v36  ;;  %v3055_v36 = vld [vmem:[%s3882_s1 + $0x378] sm:$0xff]  }
  0x4d   :  { %2741 = vmatpush3.bf16.msra.mxu1 %v3005_v37  ;;  %2720 = vmatprep.subr.bf16.mxu0 %v3006_v38  ;;  %v3056_v37 = vld [vmem:[%s3882_s1 + $0x3f8] sm:$0xff]   ;;  %v106_v38 = vcombine.high %v98_v34, %v98_v34 }
  0x4e   :  { %2742 = vmatprep.subr.bf16.mxu1 %v3007_v39  ;;  %v105_v39 = vrot.slane %v91_v35, %v3319_v41  ;;  %v3102_v35 = vld [vmem:[%s3882_s1 + $0x5d0] sm:$0xff]  }
  0x50   :  { %2721 = vmatpush3.bf16.msra.mxu0 %v3008_v40  ;;  %v3057_v40 = vld [vmem:[%s3882_s1 + $0x338] sm:$0xff]  }
  0x51   :  { %2743 = vmatpush3.bf16.msra.mxu1 %v3009_v42  ;;  %2722 = vmatprep.subr.bf16.mxu0 %v3010_v43  ;;  %v3058_v42 = vld [vmem:[%s3882_s1 + $0x3b8] sm:$0xff]   ;;  %v179_v43 = vpack.c.bf16 %v106_v38, %v106_v38 }
  0x52   :  { %2744 = vmatprep.subr.bf16.mxu1 %v3011_v44  ;;  %v107_v44 = vcombine.high %v105_v39, %v105_v39  ;;  %v3105_v38 = vld [vmem:[%s3882_s1 + $0x558] sm:$0xff]  }
  0x54   :  { %2723 = vmatpush3.bf16.msra.mxu0 %v3012_v45  ;;  %v3060_v45 = vld [vmem:[%s3882_s1 + $0x440] sm:$0xff]  }
  0x55   :  { %2745 = vmatpush3.bf16.msra.mxu1 %v3013_v46  ;;  %2724 = vmatprep.subr.bf16.mxu0 %v3014_v47  ;;  %v181_v46 = vpack.c.bf16 %v107_v44, %v107_v44  ;;  %v3061_v47 = vld [vmem:[%s3882_s1 + $0x4c0] sm:$0xff]  }
  0x56   :  { %2746 = vmatprep.subr.bf16.mxu1 %v3015_v48  ;;  %v3062_v48 = vld [vmem:[%s3882_s1 + $0x400] sm:$0xff]  }
  0x57   :  { %v3110_v44 = vld [vmem:[%s3882_s1 + $0x5e0] sm:$0xff]  }
  0x58   :  { %2725 = vmatpush3.bf16.msra.mxu0 %v3016_v49  ;;  %v178_v49 = vpack.c.bf16 %v98_v34, %v98_v34  ;;  %v3101_v34 = vld [vmem:[%s3882_s1 + $0x550] sm:$0xff]  }
  0x59   :  { %2747 = vmatpush3.bf16.msra.mxu1 %v3017_v50  ;;  %2726 = vmatprep.subr.bf16.mxu0 %v3018_v51  ;;  %v180_v50 = vpack.c.bf16 %v105_v39, %v105_v39  ;;  %v3063_v51 = vld [vmem:[%s3882_s1 + $0x480] sm:$0xff]   ;;  %v3106_v39 = vld [vmem:[%s3882_s1 + $0x5d8] sm:$0xff]  }
  0x5a   :  { %2748 = vmatprep.subr.bf16.mxu1 %v3019_v52  ;;  %v3064_v52 = vld [vmem:[%s3882_s1 + $0x448] sm:$0xff]  }
  0x5c   :  { %2727 = vmatpush3.bf16.msra.mxu0 %v3020_v54  ;;  %v3066_v54 = vld [vmem:[%s3882_s1 + $0x408] sm:$0xff]  }
  0x5d   :  { %2749 = vmatpush3.bf16.msra.mxu1 %v3021_v57  ;;  %2728 = vmatprep.subr.bf16.mxu0 %v3022_v58  ;;  %v3069_v57 = vld [vmem:[%s3882_s1 + $0x4d0] sm:$0xff]  }
  0x5e   :  { %2750 = vmatprep.subr.bf16.mxu1 %v3023_v61  ;;  %v3070_v58 = vld [vmem:[%s3882_s1 + $0x410] sm:$0xff]   ;;  %v3073_v61 = vld [vmem:[%s3882_s1 + $0x4d8] sm:$0xff]  }
  0x60   :  { %2729 = vmatpush3.bf16.msra.mxu0 %v3024_v62  ;;  %v3074_v62 = vld [vmem:[%s3882_s1 + $0x418] sm:$0xff]  }
  0x61   :  { %2751 = vmatpush3.bf16.msra.mxu1 %v3025_v1  ;;  %2758 = vmatprep.subr.bf16.mxu0 %v3027_v3  ;;  %v3077_v1 = vld [vmem:[%s3882_s1 + $0x4e0] sm:$0xff]  }
  0x62   :  { %2780 = vmatprep.subr.bf16.mxu1 %v3028_v4  ;;  %v3079_v3 = vld [vmem:[%s3882_s1 + $0x4a0] sm:$0xff]   ;;  %v3080_v4 = vld [vmem:[%s3882_s1 + $0x468] sm:$0xff]  }
  0x63   :  { %1926 = vmatmul.mubr.bf16.vlgmr.msra.gmra.mrb[8].mxu0 %v174_v6  ;;  %v3082_v6 = vld [vmem:[%s3882_s1 + $0x428] sm:$0xff]  }
  0x64   :  { %1966 = vmatmul.mubr.bf16.vlgmr.msra.gmra.mrb[8].mxu1 %v176_v7  ;;  %2759 = vmatpush3.bf16.msra.mxu0 %v3029_v5  ;;  %v3081_v5 = vld [vmem:[%s3882_s1 + $0x4e8] sm:$0xff]  }
  0x65   :  { %2781 = vmatpush3.bf16.msra.mxu1 %v3030_v8  ;;  %2760 = vmatprep.subr.bf16.mxu0 %v3031_v9  ;;  %v3083_v7 = vld [vmem:[%s3882_s1 + $0x4a8] sm:$0xff]   ;;  %v3084_v8 = vld [vmem:[%s3882_s1 + $0x470] sm:$0xff]  }
  0x66   :  { %2782 = vmatprep.subr.bf16.mxu1 %v3032_v10  ;;  %2005 = vmatprep.mubr.bf16.mxu0 %v179_v43  ;;  %v3085_v9 = vld [vmem:[%s3882_s1 + $0x4f0] sm:$0xff]   ;;  %v3109_v43 = vld [vmem:[%s3882_s1 + $0x560] sm:$0xff]  }
  0x67   :  { %2045 = vmatprep.mubr.bf16.mxu1 %v181_v46  ;;  %v3086_v10 = vld [vmem:[%s3882_s1 + $0x430] sm:$0xff]   ;;  %v3112_v46 = vld [vmem:[%s3882_s1 + $0x5a0] sm:$0xff]  }
  0x68   :  { %2761 = vmatpush3.bf16.msra.mxu0 %v3033_v11  ;;  %v32_v11 = vld [vmem:[%s3881_s0 + $0x20] sm:$0xff] }
  0x69   :  { %2783 = vmatpush3.bf16.msra.mxu1 %v3034_v12  ;;  %2762 = vmatprep.subr.bf16.mxu0 %v3035_v13  ;;  %v3087_v12 = vld [vmem:[%s3882_s1 + $0x4b0] sm:$0xff]   ;;  %v115_v13 = vrot.slane %v32_v11, %v3319_v41 }
  0x6a   :  { %2784 = vmatprep.subr.bf16.mxu1 %v3036_v14  ;;  %v108_v14 = vcombine.high %v32_v11, %v32_v11 }
  0x6c   :  { %2763 = vmatpush3.bf16.msra.mxu0 %v3037_v15  ;;  %v3088_v15 = vld [vmem:[%s3882_s1 + $0x478] sm:$0xff]  }
  0x6d   :  { %2785 = vmatpush3.bf16.msra.mxu1 %v3038_v16  ;;  %2764 = vmatprep.subr.bf16.mxu0 %v3039_v17  ;;  %v3089_v16 = vld [vmem:[%s3882_s1 + $0x4f8] sm:$0xff]   ;;  %v123_v17 = vcombine.high %v115_v13, %v115_v13 }
  0x6e   :  { %2786 = vmatprep.subr.bf16.mxu1 %v3040_v18  ;;  %v122_v18 = vrot.slane %v108_v14, %v3319_v41 }
  0x70   :  { %2765 = vmatpush3.bf16.msra.mxu0 %v3041_v19  ;;  %v3090_v19 = vld [vmem:[%s3882_s1 + $0x438] sm:$0xff]  }
  0x71   :  { %2787 = vmatpush3.bf16.msra.mxu1 %v3042_v20  ;;  %2766 = vmatprep.subr.bf16.mxu0 %v3043_v21  ;;  %v3091_v20 = vld [vmem:[%s3882_s1 + $0x4b8] sm:$0xff]   ;;  %v183_v21 = vpack.c.bf16 %v123_v17, %v123_v17 }
  0x72   :  { %2788 = vmatprep.subr.bf16.mxu1 %v3044_v22  ;;  %v124_v22 = vcombine.high %v122_v18, %v122_v18 }
  0x74   :  { %2767 = vmatpush3.bf16.msra.mxu0 %v3045_v23  ;;  %v3093_v23 = vld [vmem:[%s3882_s1 + $0x540] sm:$0xff]  }
  0x75   :  { %2789 = vmatpush3.bf16.msra.mxu1 %v3046_v24  ;;  %2768 = vmatprep.subr.bf16.mxu0 %v3047_v25  ;;  %v185_v24 = vpack.c.bf16 %v124_v22, %v124_v22  ;;  %v3094_v25 = vld [vmem:[%s3882_s1 + $0x5c0] sm:$0xff]  }
  0x76   :  { %2790 = vmatprep.subr.bf16.mxu1 %v3048_v26  ;;  %v3095_v26 = vld [vmem:[%s3882_s1 + $0x500] sm:$0xff]  }
  0x78   :  { %2769 = vmatpush3.bf16.msra.mxu0 %v3049_v27  ;;  %v182_v27 = vpack.c.bf16 %v115_v13, %v115_v13 }
  0x79   :  { %2791 = vmatpush3.bf16.msra.mxu1 %v3050_v28  ;;  %2770 = vmatprep.subr.bf16.mxu0 %v3051_v29  ;;  %v184_v28 = vpack.c.bf16 %v122_v18, %v122_v18  ;;  %v3096_v29 = vld [vmem:[%s3882_s1 + $0x580] sm:$0xff]  }
  0x7a   :  { %2792 = vmatprep.subr.bf16.mxu1 %v3052_v30  ;;  %v3097_v30 = vld [vmem:[%s3882_s1 + $0x548] sm:$0xff]  }
  0x7c   :  { %2771 = vmatpush3.bf16.msra.mxu0 %v3053_v31  ;;  %v3098_v31 = vld [vmem:[%s3882_s1 + $0x5c8] sm:$0xff]  }
  0x7d   :  { %2793 = vmatpush3.bf16.msra.mxu1 %v3054_v33  ;;  %2772 = vmatprep.subr.bf16.mxu0 %v3055_v36  ;;  %v3100_v33 = vld [vmem:[%s3882_s1 + $0x588] sm:$0xff]   ;;  %v3103_v36 = vld [vmem:[%s3882_s1 + $0x510] sm:$0xff]  }
  0x7e   :  { %2794 = vmatprep.subr.bf16.mxu1 %v3056_v37  ;;  %v3104_v37 = vld [vmem:[%s3882_s1 + $0x590] sm:$0xff]  }
  0x80   :  { %2773 = vmatpush3.bf16.msra.mxu0 %v3057_v40  ;;  %v3107_v40 = vld [vmem:[%s3882_s1 + $0x518] sm:$0xff]  }
  0x81   :  { %2795 = vmatpush3.bf16.msra.mxu1 %v3058_v42  ;;  %2802 = vmatprep.subr.bf16.mxu0 %v3060_v45  ;;  %v3108_v42 = vld [vmem:[%s3882_s1 + $0x598] sm:$0xff]   ;;  %v3111_v45 = vld [vmem:[%s3882_s1 + $0x520] sm:$0xff]  }
  0x82   :  { %2824 = vmatprep.subr.bf16.mxu1 %v3061_v47  ;;  %v3113_v47 = vld [vmem:[%s3882_s1 + $0x568] sm:$0xff]  }
  0x83   :  { %2006 = vmatmul.mubr.bf16.vlgmr.msra.gmra.mrb[12].mxu0 %v178_v49  ;;  %v3115_v49 = vld [vmem:[%s3882_s1 + $0x528] sm:$0xff]  }
  0x84   :  { %2046 = vmatmul.mubr.bf16.vlgmr.msra.gmra.mrb[12].mxu1 %v180_v50  ;;  %2803 = vmatpush3.bf16.msra.mxu0 %v3062_v48  ;;  %v3114_v48 = vld [vmem:[%s3882_s1 + $0x5e8] sm:$0xff]  }
  0x85   :  { %2825 = vmatpush3.bf16.msra.mxu1 %v3063_v51  ;;  %2804 = vmatprep.subr.bf16.mxu0 %v3064_v52  ;;  %v3116_v50 = vld [vmem:[%s3882_s1 + $0x5a8] sm:$0xff]   ;;  %v3117_v51 = vld [vmem:[%s3882_s1 + $0x570] sm:$0xff]  }
  0x86   :  { %2826 = vmatprep.subr.bf16.mxu1 %v3065_v53  ;;  %2085 = vmatprep.mubr.bf16.mxu0 %v183_v21  ;;  %v3118_v52 = vld [vmem:[%s3882_s1 + $0x5f0] sm:$0xff]  }
  0x87   :  { %2125 = vmatprep.mubr.bf16.mxu1 %v185_v24  ;;  %v3119_v53 = vld [vmem:[%s3882_s1 + $0x530] sm:$0xff]  }
  0x88   :  { %2805 = vmatpush3.bf16.msra.mxu0 %v3066_v54  ;;  %v3120_v54 = vld [vmem:[%s3882_s1 + $0x5b0] sm:$0xff]  }
  0x89   :  { %2827 = vmatpush3.bf16.msra.mxu1 %v3067_v55  ;;  %2806 = vmatprep.subr.bf16.mxu0 %v3068_v56  ;;  %v33_v55 = vld [vmem:[%s3881_s0 + $0x28] sm:$0xff]  ;;  %v3121_v56 = vld [vmem:[%s3882_s1 + $0x578] sm:$0xff]  }
  0x8a   :  { %2828 = vmatprep.subr.bf16.mxu1 %v3069_v57  ;;  %v3122_v57 = vld [vmem:[%s3882_s1 + $0x5f8] sm:$0xff]  }
  0x8c   :  { %2807 = vmatpush3.bf16.msra.mxu0 %v3070_v58  ;;  %v132_v58 = vrot.slane %v33_v55, %v3319_v41 }
  0x8d   :  { %2829 = vmatpush3.bf16.msra.mxu1 %v3071_v59  ;;  %2808 = vmatprep.subr.bf16.mxu0 %v3072_v60  ;;  %v125_v59 = vcombine.high %v33_v55, %v33_v55 }
  0x8e   :  { %2830 = vmatprep.subr.bf16.mxu1 %v3073_v61  ;;  %v140_v60 = vcombine.high %v132_v58, %v132_v58 }
  0x8f   :  { %v139_v61 = vrot.slane %v125_v59, %v3319_v41 }
  0x90   :  { %2809 = vmatpush3.bf16.msra.mxu0 %v3074_v62  ;;  %v187_v62 = vpack.c.bf16 %v140_v60, %v140_v60 }
  0x91   :  { %2831 = vmatpush3.bf16.msra.mxu1 %v3075_v63  ;;  %2810 = vmatprep.subr.bf16.mxu0 %v3076_v0  ;;  %v141_v63 = vcombine.high %v139_v61, %v139_v61  ;;  %v3123_v0 = vld [vmem:[%s3882_s1 + $0x538] sm:$0xff]  }
  0x92   :  { %2832 = vmatprep.subr.bf16.mxu1 %v3077_v1  ;;  %v3124_v1 = vld [vmem:[%s3882_s1 + $0x5b8] sm:$0xff]  }
  0x94   :  { %2811 = vmatpush3.bf16.msra.mxu0 %v3078_v2 }
  0x95   :  { %2833 = vmatpush3.bf16.msra.mxu1 %v3079_v3  ;;  %2812 = vmatprep.subr.bf16.mxu0 %v3080_v4 }
  0x96   :  { %2834 = vmatprep.subr.bf16.mxu1 %v3081_v5 }
  0x98   :  { %2813 = vmatpush3.bf16.msra.mxu0 %v3082_v6 }
  0x99   :  { %2835 = vmatpush3.bf16.msra.mxu1 %v3083_v7  ;;  %2814 = vmatprep.subr.bf16.mxu0 %v3084_v8 }
  0x9a   :  { %2836 = vmatprep.subr.bf16.mxu1 %v3085_v9 }
  0x9c   :  { %2815 = vmatpush3.bf16.msra.mxu0 %v3086_v10 }
  0x9d   :  { %2837 = vmatpush3.bf16.msra.mxu1 %v3087_v12  ;;  %2816 = vmatprep.subr.bf16.mxu0 %v3088_v15 }
  0x9e   :  { %2838 = vmatprep.subr.bf16.mxu1 %v3089_v16 }
  0xa0   :  { %2817 = vmatpush3.bf16.msra.mxu0 %v3090_v19 }
  0xa1   :  { %2839 = vmatpush3.bf16.msra.mxu1 %v3091_v20  ;;  %2846 = vmatprep.subr.bf16.mxu0 %v3093_v23 }
  0xa2   :  { %2868 = vmatprep.subr.bf16.mxu1 %v3094_v25 }
  0xa3   :  { %2086 = vmatmul.mubr.bf16.vlgmr.msra.gmra.mrb[16].mxu0 %v182_v27 }
  0xa4   :  { %2126 = vmatmul.mubr.bf16.vlgmr.msra.gmra.mrb[16].mxu1 %v184_v28  ;;  %2847 = vmatpush3.bf16.msra.mxu0 %v3095_v26 }
  0xa5   :  { %2869 = vmatpush3.bf16.msra.mxu1 %v3096_v29  ;;  %2848 = vmatprep.subr.bf16.mxu0 %v3097_v30 }
  0xa6   :  { %2870 = vmatprep.subr.bf16.mxu1 %v3098_v31 }
  0xa8   :  { %2849 = vmatpush3.bf16.msra.mxu0 %v3099_v32 }
  0xa9   :  { %2871 = vmatpush3.bf16.msra.mxu1 %v3100_v33  ;;  %2850 = vmatprep.subr.bf16.mxu0 %v3101_v34 }
  0xaa   :  { %2872 = vmatprep.subr.bf16.mxu1 %v3102_v35 }
  0xac   :  { %2851 = vmatpush3.bf16.msra.mxu0 %v3103_v36 }
  0xad   :  { %2873 = vmatpush3.bf16.msra.mxu1 %v3104_v37  ;;  %2852 = vmatprep.subr.bf16.mxu0 %v3105_v38 }
  0xae   :  { %2874 = vmatprep.subr.bf16.mxu1 %v3106_v39 }
  0xb0   :  { %2853 = vmatpush3.bf16.msra.mxu0 %v3107_v40 }
  0xb1   :  { %2875 = vmatpush3.bf16.msra.mxu1 %v3108_v42  ;;  %2854 = vmatprep.subr.bf16.mxu0 %v3109_v43 }
  0xb2   :  { %2876 = vmatprep.subr.bf16.mxu1 %v3110_v44 }
  0xb4   :  { %2855 = vmatpush3.bf16.msra.mxu0 %v3111_v45 }
  0xb5   :  { %2877 = vmatpush3.bf16.msra.mxu1 %v3112_v46  ;;  %2856 = vmatprep.subr.bf16.mxu0 %v3113_v47 }
  0xb6   :  { %2878 = vmatprep.subr.bf16.mxu1 %v3114_v48 }
  0xb8   :  { %2857 = vmatpush3.bf16.msra.mxu0 %v3115_v49 }
  0xb9   :  { %2879 = vmatpush3.bf16.msra.mxu1 %v3116_v50  ;;  %2858 = vmatprep.subr.bf16.mxu0 %v3117_v51 }
  0xba   :  { %2880 = vmatprep.subr.bf16.mxu1 %v3118_v52 }
  0xbc   :  { %2859 = vmatpush3.bf16.msra.mxu0 %v3119_v53 }
  0xbd   :  { %2881 = vmatpush3.bf16.msra.mxu1 %v3120_v54 }
  0xbe   :  { %12 = vsyncpa [#allocation3], 0  ;;  %2860 = vmatprep.subr.bf16.mxu0 %v3121_v56  ;;  %2882 = vmatprep.subr.bf16.mxu1 %v3122_v57  ;;  %v189_v2 = vpack.c.bf16 %v141_v63, %v141_v63  ;;  %v186_v3 = vpack.c.bf16 %v132_v58, %v132_v58  ;;  %v188_v41 = vpack.c.bf16 %v139_v61, %v139_v61  ;;  %v2419_v6 = vld [vmem:[%s3883_s2] ss:$0 sm:$0xff]  ;;  %v3171_v30 = vmov 0.0   ;;  %v3127_v31 = vld [vmem:[%s3884_s3 + $0x8] sm:$0xff]  }
  0xbf   :  { %2165 = vmatprep.mubr.bf16.mxu0 %v187_v62  ;;  %v3126_v29 = vld [vmem:[%s3884_s3] sm:$0xff]   ;;  %v3128_v32 = vld [vmem:[%s3884_s3 + $0x10] sm:$0xff]   ;;  %v3129_v33 = vld [vmem:[%s3884_s3 + $0x18] ss:$0 sps:$4 sm:$0x11]   ;;  %vm2259_vm0 = vcmask 1040384  }
  0xc0   :  { %2205 = vmatprep.mubr.bf16.mxu1 %v189_v2  ;;  %2861 = vmatpush3.bf16.msra.mxu0 %v3123_v0  ;;  %v2261_v36 = vsel %vm2259_vm0, %v3129_v33, 0  ;;  %vm3172_vm1 = vmmov 0   ;;  %vm2255_vm2 = vcmask 408576   ;;  %vm2391_vm3 = vcmask 1041408  }
  0xc1   :  { %2883 = vmatpush3.bf16.msra.mxu1 %v3124_v1  ;;  %2900 = vmatprep.subr.bf16.mxu0 %v3171_v30 }
  0xc2   :  { %2912 = vmatprep.subr.bf16.mxu1 %v3171_v30 }
  0xc3   :  { %2166 = vmatmul.mubr.bf16.vlgmr.msra.gmra.mrb[20].mxu0 %v186_v3 }
  0xc4   :  { %2206 = vmatmul.mubr.bf16.vlgmr.msra.gmra.mrb[20].mxu1 %v188_v41  ;;  %2901 = vmatpush3.bf16.msra.mxu0 %v3126_v29  ;;  %v2613_v29 = vld [vmem:[%s3885_s4] ss:$0 sm:$0xff]  ;;  %s3173_s4 = smov [#allocation2]  }
  0xc5   :  { %2902 = vmatprep.subr.bf16.mxu0 %v3171_v30  ;;  %2908 = vmatprep.mubr.msk.bf16.mxu0 %vm3172_vm1, %v3171_v30 }
  0xc6   :  { %2920 = vmatprep.mubr.msk.bf16.mxu1 %vm3172_vm1, %v3171_v30 }
  0xc8   :  { %2903 = vmatpush3.bf16.msra.mxu0 %v3127_v31 }
  0xc9   :  { %2904 = vmatprep.subr.bf16.mxu0 %v3171_v30 }
  0xcc   :  { %2905 = vmatpush3.bf16.msra.mxu0 %v3128_v32 }
  0xcd   :  { %2906 = vmatprep.subr.bf16.mxu0 %v3171_v30 }
  0xd0   :  { %2907 = vmatpush3.bf16.msra.mxu0 %v2261_v36 }
  0xf6   :  { %v2642_v4 = vpop.f32.mrb[0].mxu0 }
  0xf7   :  { %v2664_v5 = vpop.f32.mrb[0].mxu1  ;;  %v2643_v7 = vpop.f32.mrb[1].mxu0 }
  0xf8   :  { %v2665_v8 = vpop.f32.mrb[1].mxu1  ;;  %v2644_v9 = vadd.f32 %v2643_v7, %v2642_v4  ;;  %v2645_v11 = vpop.f32.mrb[2].mxu0 }
  0xf9   :  { %v2666_v10 = vadd.f32 %v2665_v8, %v2664_v5  ;;  %v2667_v12 = vpop.f32.mrb[2].mxu1  ;;  %v2646_v13 = vpop.f32.mrb[3].mxu0 }
  0xfa   :  { %v2668_v14 = vpop.f32.mrb[3].mxu1  ;;  %v1768_v15 = vadd.f32 %v2644_v9, %v2419_v6 }
  0xfc   :  { %v1808_v16 = vadd.f32 %v2666_v10, %v1768_v15 }
 0x116   :  { %v2686_v17 = vpop.f32.mrb[4].mxu0 }
 0x117   :  { %v2708_v18 = vpop.f32.mrb[4].mxu1  ;;  %v2687_v19 = vpop.f32.mrb[5].mxu0 }
 0x118   :  { %v2709_v20 = vpop.f32.mrb[5].mxu1  ;;  %v2688_v21 = vadd.f32 %v2687_v19, %v2686_v17  ;;  %v2689_v23 = vpop.f32.mrb[6].mxu0 }
 0x119   :  { %v2710_v22 = vadd.f32 %v2709_v20, %v2708_v18  ;;  %v2711_v24 = vpop.f32.mrb[6].mxu1  ;;  %v2690_v25 = vpop.f32.mrb[7].mxu0 }
 0x11a   :  { %v2712_v26 = vpop.f32.mrb[7].mxu1  ;;  %v1848_v27 = vadd.f32 %v2688_v21, %v1808_v16  ;;  %v3130_v24 = vld [vmem:[%s3886_s5] sm:$0xff]   ;;  %v3131_v25 = vld [vmem:[%s3886_s5 + $0x8] sm:$0xff]  }
 0x11b   :  { %2913 = vmatpush3.bf16.msra.mxu1 %v3130_v24  ;;  %v3132_v26 = vld [vmem:[%s3886_s5 + $0x10] sm:$0xff]  }
 0x11c   :  { %v1888_v28 = vadd.f32 %v2710_v22, %v1848_v27  ;;  %2914 = vmatprep.subr.bf16.mxu1 %v3171_v30  ;;  %v3133_v27 = vld [vmem:[%s3886_s5 + $0x18] ss:$0 sps:$4 sm:$0x11]  }
 0x11f   :  { %2915 = vmatpush3.bf16.msra.mxu1 %v3131_v25 }
 0x120   :  { %2916 = vmatprep.subr.bf16.mxu1 %v3171_v30 }
 0x123   :  { %2917 = vmatpush3.bf16.msra.mxu1 %v3132_v26 }
 0x124   :  { %2918 = vmatprep.subr.bf16.mxu1 %v3171_v30 }
 0x136   :  { %v2730_v34 = vpop.f32.mrb[8].mxu0 }
 0x137   :  { %v2752_v35 = vpop.f32.mrb[8].mxu1  ;;  %v2731_v37 = vpop.f32.mrb[9].mxu0 }
 0x138   :  { %v2753_v38 = vpop.f32.mrb[9].mxu1  ;;  %v2732_v39 = vadd.f32 %v2731_v37, %v2730_v34  ;;  %v2733_v42 = vpop.f32.mrb[10].mxu0 }
 0x139   :  { %v2754_v40 = vadd.f32 %v2753_v38, %v2752_v35  ;;  %v2755_v43 = vpop.f32.mrb[10].mxu1  ;;  %v2734_v44 = vpop.f32.mrb[11].mxu0 }
 0x13a   :  { %v2756_v45 = vpop.f32.mrb[11].mxu1  ;;  %v1928_v46 = vadd.f32 %v2732_v39, %v1888_v28  ;;  %v2349_v28 = vsel %vm2259_vm0, %v3133_v27, 0 }
 0x13b   :  { %2919 = vmatpush3.bf16.msra.mxu1 %v2349_v28 }
 0x13c   :  { %v1968_v47 = vadd.f32 %v2754_v40, %v1928_v46  ;;  %v2620_v40 = vld [vmem:[%s3887_s6] ss:$0 sm:$0xff]  ;;  %s2411_s6 = sshll.u32 %s3173_s4, 4  ;;  %s2412_s6 = int_to_ptr.vmem [resolvable:$true] %s2411_s6 }
 0x13d   :  { %s3146_s23 = scalar_lea.vmem %s2412_s6, 32  ;;  %p3151_p1 = scmp.lt.s32.totalorder %s2412_s6, %s2412_s6 }
 0x13e   :  { %p3147_p0 = scmp.ne.s32.totalorder %s2412_s6, %s3146_s23  ;;  %p3152_p2 = scmp.lt.s32.totalorder %s3146_s23, %s3146_s23 }
 0x140   :  { %p3153_p3 = por %p3152_p2, %p3151_p1 }
 0x142   :  { %p3154_p4 = pnand %p3153_p3, %p3147_p0 }
 0x156   :  { %v2774_v48 = vpop.f32.mrb[12].mxu0 }
 0x157   :  { %v2796_v49 = vpop.f32.mrb[12].mxu1  ;;  %v2775_v50 = vpop.f32.mrb[13].mxu0 }
 0x158   :  { %v2797_v51 = vpop.f32.mrb[13].mxu1  ;;  %v2776_v52 = vadd.f32 %v2775_v50, %v2774_v48  ;;  %v2777_v54 = vpop.f32.mrb[14].mxu0 }
 0x159   :  { %v2798_v53 = vadd.f32 %v2797_v51, %v2796_v49  ;;  %v2799_v55 = vpop.f32.mrb[14].mxu1  ;;  %v2778_v56 = vpop.f32.mrb[15].mxu0 }
 0x15a   :  { %v2800_v57 = vpop.f32.mrb[15].mxu1  ;;  %v2008_v58 = vadd.f32 %v2776_v52, %v1968_v47 }
 0x15c   :  { %v2048_v59 = vadd.f32 %v2798_v53, %v2008_v58 }
 0x176   :  { %v2818_v60 = vpop.f32.mrb[16].mxu0 }
 0x177   :  { %v2840_v61 = vpop.f32.mrb[16].mxu1  ;;  %v2819_v62 = vpop.f32.mrb[17].mxu0 }
 0x178   :  { %v2841_v63 = vpop.f32.mrb[17].mxu1  ;;  %v2820_v0 = vadd.f32 %v2819_v62, %v2818_v60  ;;  %v2821_v2 = vpop.f32.mrb[18].mxu0 }
 0x179   :  { %v2842_v1 = vadd.f32 %v2841_v63, %v2840_v61  ;;  %v2843_v3 = vpop.f32.mrb[18].mxu1  ;;  %v2822_v41 = vpop.f32.mrb[19].mxu0 }
 0x17a   :  { %v2844_v4 = vpop.f32.mrb[19].mxu1  ;;  %v2088_v5 = vadd.f32 %v2820_v0, %v2048_v59 }
 0x17c   :  { %v2128_v6 = vadd.f32 %v2842_v1, %v2088_v5 }
 0x196   :  { %v2862_v7 = vpop.f32.mrb[20].mxu0 }
 0x197   :  { %v2884_v8 = vpop.f32.mrb[20].mxu1  ;;  %v2863_v9 = vpop.f32.mrb[21].mxu0 }
 0x198   :  { %v2885_v10 = vpop.f32.mrb[21].mxu1  ;;  %v2864_v11 = vadd.f32 %v2863_v9, %v2862_v7  ;;  %v2865_v13 = vpop.f32.mrb[22].mxu0 }
 0x199   :  { %v2886_v12 = vadd.f32 %v2885_v10, %v2884_v8  ;;  %v2887_v14 = vpop.f32.mrb[22].mxu1  ;;  %v2866_v15 = vpop.f32.mrb[23].mxu0 }
 0x19a   :  { %v2888_v16 = vpop.f32.mrb[23].mxu1  ;;  %v2168_v17 = vadd.f32 %v2864_v11, %v2128_v6 }
 0x19c   :  { %v2208_v18 = vadd.f32 %v2886_v12, %v2168_v17 }
 0x19e   :  { %v2612_v19 = vmul.f32 -1.442695, %v2208_v18 }
 0x1a0   :  { %3134 = vpow2.f32 %v2612_v19 }
 0x1aa   :  { %v3135_v20 = vpop.eup %3134 }
 0x1ab   :  { %v2216_v21 = vadd.f32 1.0, %v3135_v20 }
 0x1ad   :  { %3136 = vrcp.f32 %v2216_v21 }
 0x1b7   :  { %v3137_v22 = vpop.eup %3136 }
 0x1b8   :  { %v2219_v23 = vpack.c.bf16 %v3137_v22, %v3137_v22 }
 0x1ba   :  { %2909 = vmatmul.mubr.msk.bf16.vlgmr.msra.gmra.mrb[24].mxu0 %vm2255_vm2, %v2219_v23 }
 0x28d   :  { %v2297_v31 = vpop.f32.mrb[24].mxu0 }
 0x28e   :  { %v2298_v32 = vadd.f32 %v2613_v29, %v2297_v31  ;;  %v2910_v33 = vpop.f32.mrb[25].mxu0 }
 0x28f   :  { %v2300_v34 = vpop.f32.mrb[26].mxu0 }
 0x290   :  { %v2619_v35 = vmul.f32 -1.442695, %v2298_v32  ;;  %v2911_v36 = vpop.f32.mrb[27].mxu0 }
 0x292   :  { %3138 = vpow2.f32 %v2619_v35 }
 0x29c   :  { %v3139_v37 = vpop.eup %3138 }
 0x29d   :  { %v2306_v30 = vadd.f32 1.0, %v3139_v37 }
 0x29f   :  { %3140 = vrcp.f32 %v2306_v30 }
 0x2a9   :  { %v3141_v38 = vpop.eup %3140 }
 0x2aa   :  { %v2309_v39 = vpack.c.bf16 %v3141_v38, %v3141_v38 }
 0x2ac   :  { %2921 = vmatmul.mubr.msk.bf16.vlgmr.msra.gmra.mrb[24].mxu1 %vm2255_vm2, %v2309_v39 }
 0x37f   :  { %v2385_v42 = vpop.f32.mrb[24].mxu1 }
 0x380   :  { %v2386_v43 = vadd.f32 %v2620_v40, %v2385_v42  ;;  %v2922_v44 = vpop.f32.mrb[25].mxu1 }
 0x381   :  { %v2388_v45 = vpop.f32.mrb[26].mxu1 }
 0x382   :  { %v2923_v46 = vpop.f32.mrb[27].mxu1  ;;  %v2392_v47 = vsel %vm2391_vm3, %v2386_v43, -inf }
 0x383   :  { %2393 = vmax.xlane.f32.xlu0 %v2392_v47 }
 0x410   :  { %v2394_v48 = vpop.xlane.xlu0 %2393 }
 0x411   :  { %v2395_v49 = vsub.f32 %v2386_v43, %v2394_v48 }
 0x413   :  { %v2396_v50 = vmul.f32 1.442695, %v2395_v49 }
 0x415   :  { %3142 = vpow2.f32 %v2396_v50 }
 0x41f   :  { %v3143_v51 = vpop.eup %3142 }
 0x420   :  { %v2398_v52 = vsel %vm2391_vm3, %v3143_v51, 0.0 }
 0x421   :  { %2399 = vadd.xlane.f32.xlu0 %v2398_v52 }
 0x4ae   :  { %v2400_v53 = vpop.xlane.xlu0 %2399 }
 0x4af   :  { %3144 = vlog2.f32 %v2400_v53 }
 0x4b9   :  { %v3145_v54 = vpop.eup %3144 }
 0x4ba   :  { %v2402_v55 = vmul.f32 0.6931472, %v3145_v54 }
 0x4bc   :  { %v2403_v56 = vsub.f32 %v2395_v49, %v2402_v55 }
 0x4be   :  { %2404 = vst [vmem:[#allocation2] sm:$0x3] %v2403_v56 }
 0x4bf   :  { %3157 = shalt.err (!%p3154_p4)
}
 0x4c0   :  { %s3158_s25 = scalar_lea.hbm %s3888_s7, 32 }
 0x4c1   :  { %p3159_p5 = scmp.ne.s32.totalorder %s3888_s7, %s3158_s25  ;;  %p3162_p6 = scmp.lt.u32.totalorder %s3158_s25, %s3888_s7 }
 0x4c3   :  { %p3164_p7 = pnand %p3162_p6, %p3159_p5 }
 0x4c5   :  { %3167 = shalt.err (!%p3164_p7)
}
 0x4c6   :  { %2414 = dma.vmem_to_hbm [thread:$0]  %s2412_s6, 32, %s3888_s7, [#allocation3]  }
 0x4c7   :  { %3168 = dma.done.wait [#allocation3], 32  }
 0x4c8   :  { %3169 = vsyncadd [#allocation3], 4294967264 }
 0x4c9   :  { %2418 = vsyncpa [#allocation3], 1 }

</bundles_post_ra>
